<compile_context>
chip_gen: v5e
topology: v5e:2x2
jax: 0.10.0
libtpu: 0.0.40
codegen_flags: <defaults>
</compile_context>

<pallas_src>
import functools

import numpy as np
import jax
import jax.numpy as jnp
from jax import lax
from jax.experimental import pallas as pl
from jax.experimental.pallas import tpu as pltpu


# Contract last dim of both operands: A (M, K) x B (O, K) -> (M, O) == A @ B^T,
# without materializing any transpose.
_DN_LAST_LAST = (((1,), (1,)), ((), ()))


def _hyper_attention2_kernel(x_ref, w_ref, m_ref, s_ref, o_ref, *, use_bf16):
    """One (batch b, sequence-tile n) grid step.

    x_ref : (1, TN, C)  input tile for batch b
    w_ref : (C, C)      shared base weight (constant index -> stays resident)
    m_ref : (1, 1, C)   mean_proj output for batch b
    s_ref : (1, 1, C)   std_proj  output for batch b
    o_ref : (1, TN, C)  output tile
    """
    x = x_ref[0]                                    # (TN, C)
    w = w_ref[...].astype(jnp.float32)              # (C, C)
    m = m_ref[0]                                    # (1, C), f32
    s = s_ref[0]                                    # (1, C), f32

    # Dynamic weights: base weight + per-batch row vector broadcast over rows,
    # i.e. w1[o, c] = W[o, c] + m[c]  (matches torch's (1,C,C) + (B,1,C) broadcast).
    # Done in f32 on the VPU (v5e has no bf16 VPU path anyway).
    w1 = w + m
    w2 = w + s

    if use_bf16:
        # bf16 operands / f32 accumulation: MXU fast path on v6e / v7x.
        x_mm = x.astype(jnp.bfloat16)
        w1_mm = w1.astype(jnp.bfloat16)
        w2_mm = w2.astype(jnp.bfloat16)
    else:
        x_mm = x.astype(jnp.float32)
        w1_mm = w1
        w2_mm = w2

    # F.linear(x, W1) = x @ W1^T via dot_general (no transpose).
    h = lax.dot_general(x_mm, w1_mm, _DN_LAST_LAST,
                        preferred_element_type=jnp.float32)        # (TN, C) f32
    h = jnp.maximum(h, 0.0)                                         # ReLU on f32 acc
    h_mm = h.astype(jnp.bfloat16) if use_bf16 else h
    y = lax.dot_general(h_mm, w2_mm, _DN_LAST_LAST,
                        preferred_element_type=jnp.float32)         # (TN, C) f32

    o_ref[0] = y.astype(o_ref.dtype)


def _pick_block_n(n, target=512):
    """Largest multiple of 8 that divides n and is <= target; else the full n."""
    if n <= target:
        return n
    start = target - (target % 8)
    for tn in range(start, 7, -8):
        if n % tn == 0:
            return tn
    return n  # fallback: whole sequence (full-extent block is always legal)


def hyper_attention2(x, w_base, wm, bm, ws, bs, *, use_bf16=False, block_n=None):
    """Pallas-TPU forward of HyperAttention2.

    x       : (B, N, C)
    w_base  : (C, C)  == module.weight[0]
    wm, bm  : mean_proj weight / bias
    ws, bs  : std_proj  weight / bias
    """
    B, N, C = x.shape

    # ---- Statistics + tiny (1,C)x(C,C) projections hoisted out of the hot kernel.
    # They are <=1/8 MXU occupancy and would force the whole (N, C) sequence to be
    # resident per grid step, blocking the N tiling below.  f32 accumulation.
    # NOTE: unbiased std divides by (N-1); N == 1 yields inf/NaN, same as torch.
    xf = x.astype(jnp.float32)
    mean = jnp.mean(xf, axis=1)                                     # (B, C)
    std = jnp.std(xf, axis=1, ddof=1)                               # (B, C)
    m = mean @ wm.astype(jnp.float32).T + bm.astype(jnp.float32)    # (B, C)
    s = std @ ws.astype(jnp.float32).T + bs.astype(jnp.float32)     # (B, C)
    m3 = m.reshape(B, 1, C)
    s3 = s.reshape(B, 1, C)

    if block_n is None:
        block_n = _pick_block_n(N)
    n_tiles = N // block_n  # block_n divides N (or equals it) by construction

    kernel = functools.partial(_hyper_attention2_kernel, use_bf16=use_bf16)

    # TODO(synk): for very small N*C, a (TB, N, C) multi-batch block would amortize
    # the ~0.35us per-grid-step overhead further; omitted to keep the kernel simple.
    return pl.pallas_call(
        kernel,
        out_shape=jax.ShapeDtypeStruct((B, N, C), x.dtype),
        grid_spec=pltpu.PrefetchScalarGridSpec(
            num_scalar_prefetch=0,
            grid=(B, n_tiles),
            in_specs=[
                pl.BlockSpec((1, block_n, C), lambda b, n: (b, n, 0)),  # x tile
                pl.BlockSpec((C, C), lambda b, n: (0, 0)),              # base weight
                pl.BlockSpec((1, 1, C), lambda b, n: (b, 0, 0)),        # m[b]
                pl.BlockSpec((1, 1, C), lambda b, n: (b, 0, 0)),        # s[b]
            ],
            out_specs=pl.BlockSpec((1, block_n, C), lambda b, n: (b, n, 0)),
        ),
        compiler_params=pltpu.CompilerParams(
            # Both axes independent -> megacore sharding (grid extent B * n_tiles).
            dimension_semantics=("parallel", "parallel"),
            # Explicit scoped-VMEM budget; tiles are small after N tiling and this
            # stays under v7x's 64 MiB physical VMEM.
            vmem_limit_bytes=48 * 1024 * 1024,
        ),
    )(x, w_base, m3, s3)


def hyper_attention2_ref(x, w_base, wm, bm, ws, bs):
    # Pure-JAX reference of the PyTorch forward.
    mean = jnp.mean(x, axis=1, keepdims=True)                       # (B, 1, C)
    std = jnp.std(x, axis=1, keepdims=True, ddof=1)                 # unbiased
    m = mean @ wm.T + bm
    s = std @ ws.T + bs
    w1 = w_base[None] + m                                           # (B, C, C)
    w2 = w_base[None] + s
    h = jnp.einsum("bnc,boc->bno", x, w1)
    h = jnp.maximum(h, 0.0)
    return jnp.einsum("bnc,boc->bno", h, w2)


def _make_inputs(B, N, C, key):
    kx, kw, kwm, kbm, kws, kbs = jax.random.split(key, 6)
    x = jax.random.normal(kx, (B, N, C), dtype=jnp.float32)
    # parameters (deterministic synthetic init, shapes from __init__)
    w_base = jax.random.normal(kw, (C, C), dtype=jnp.float32) * 0.02   # self.weight[0]
    lim = 1.0 / np.sqrt(C)
    wm = jax.random.uniform(kwm, (C, C), minval=-lim, maxval=lim, dtype=jnp.float32)
    bm = jax.random.uniform(kbm, (C,), minval=-lim, maxval=lim, dtype=jnp.float32)
    ws = jax.random.uniform(kws, (C, C), minval=-lim, maxval=lim, dtype=jnp.float32)
    bs = jax.random.uniform(kbs, (C,), minval=-lim, maxval=lim, dtype=jnp.float32)
    return x, w_base, wm, bm, ws, bs


if __name__ == "__main__":
    # Lane-dense shape (C multiple of 128), 2x2 parallel grid (B=2, N/TN=2).
    args = _make_inputs(2, 256, 128, jax.random.PRNGKey(0))
    ref = hyper_attention2_ref(*args)

    out = jax.block_until_ready(hyper_attention2(*args, block_n=128))
    np.testing.assert_allclose(np.asarray(out), np.asarray(ref), rtol=1e-4, atol=1e-4)

    # bf16-operand / f32-accumulate fast path (v6e / v7x MXU fast path).
    out_bf16 = jax.block_until_ready(
        hyper_attention2(*args, use_bf16=True, block_n=128))
    np.testing.assert_allclose(np.asarray(out_bf16), np.asarray(ref),
                               rtol=5e-2, atol=5e-2)

    # Tiny shape (C < 128, single N tile) exercises the full-extent block path.
    args_small = _make_inputs(2, 8, 32, jax.random.PRNGKey(1))
    ref_small = hyper_attention2_ref(*args_small)
    out_small = jax.block_until_ready(hyper_attention2(*args_small))
    np.testing.assert_allclose(np.asarray(out_small), np.asarray(ref_small),
                               rtol=1e-4, atol=1e-4)

    print("KERNEL_OK")
</pallas_src>

<mosaic_0001>
module attributes {stable_mosaic.version = 11 : i64} {
  func.func @_hyper_attention2_kernel(%arg0: i32, %arg1: i32, %arg2: memref<1x128x128xf32, #tpu.memory_space<vmem>>, %arg3: memref<128x128xf32, #tpu.memory_space<vmem>>, %arg4: memref<1x1x128xf32, #tpu.memory_space<vmem>>, %arg5: memref<1x1x128xf32, #tpu.memory_space<vmem>>, %arg6: memref<1x128x128xf32, #tpu.memory_space<vmem>>) attributes {dimension_semantics = [#tpu.dimension_semantics<parallel>, #tpu.dimension_semantics<parallel>], iteration_bounds = array<i64: 2, 2>, scalar_prefetch = 0 : i64, scratch_operands = 0 : i64, tpu.core_type = #tpu.core_type<tc>, window_params = [{transform_indices = @transform_0, window_bounds = array<i64: 1, 128, 128>}, {pipeline_mode = #tpu.pipeline_mode<synchronous>, transform_indices = @transform_1, window_bounds = array<i64: 128, 128>}, {transform_indices = @transform_2, window_bounds = array<i64: 1, 1, 128>}, {transform_indices = @transform_3, window_bounds = array<i64: 1, 1, 128>}, {transform_indices = @transform_4, window_bounds = array<i64: 1, 128, 128>}]} {
    %c0 = arith.constant 0 : index
    %c0_0 = arith.constant 0 : index
    %c0_1 = arith.constant 0 : index
    %0 = vector.load %arg2[%c0, %c0_0, %c0_1] : memref<1x128x128xf32, #tpu.memory_space<vmem>>, vector<1x128x128xf32>
    %1 = vector.shape_cast %0 : vector<1x128x128xf32> to vector<128x128xf32>
    %c0_2 = arith.constant 0 : index
    %c0_3 = arith.constant 0 : index
    %2 = vector.load %arg3[%c0_2, %c0_3] : memref<128x128xf32, #tpu.memory_space<vmem>>, vector<128x128xf32>
    %c0_4 = arith.constant 0 : index
    %c0_5 = arith.constant 0 : index
    %c0_6 = arith.constant 0 : index
    %3 = vector.load %arg4[%c0_4, %c0_5, %c0_6] : memref<1x1x128xf32, #tpu.memory_space<vmem>>, vector<1x1x128xf32>
    %4 = vector.shape_cast %3 : vector<1x1x128xf32> to vector<1x128xf32>
    %c0_7 = arith.constant 0 : index
    %c0_8 = arith.constant 0 : index
    %c0_9 = arith.constant 0 : index
    %5 = vector.load %arg5[%c0_7, %c0_8, %c0_9] : memref<1x1x128xf32, #tpu.memory_space<vmem>>, vector<1x1x128xf32>
    %6 = vector.shape_cast %5 : vector<1x1x128xf32> to vector<1x128xf32>
    %7 = vector.broadcast %4 : vector<1x128xf32> to vector<128x128xf32>
    %8 = arith.addf %2, %7 : vector<128x128xf32>
    %9 = vector.broadcast %6 : vector<1x128xf32> to vector<128x128xf32>
    %10 = arith.addf %2, %9 : vector<128x128xf32>
    %cst = arith.constant dense<0.000000e+00> : vector<128x128xf32>
    %11 = tpu.matmul %1, %8, %cst {dimension_numbers = #tpu.dot_dimension_numbers<[1], [1], [0], [0], [0, 0, 1, 0], [], []>} : vector<128x128xf32>, vector<128x128xf32>, vector<128x128xf32> -> vector<128x128xf32>
    %cst_10 = arith.constant 0.000000e+00 : f32
    %12 = vector.broadcast %cst_10 : f32 to vector<128x128xf32>
    %13 = arith.maximumf %11, %12 : vector<128x128xf32>
    %cst_11 = arith.constant dense<0.000000e+00> : vector<128x128xf32>
    %14 = tpu.matmul %13, %10, %cst_11 {dimension_numbers = #tpu.dot_dimension_numbers<[1], [1], [0], [0], [0, 0, 1, 0], [], []>} : vector<128x128xf32>, vector<128x128xf32>, vector<128x128xf32> -> vector<128x128xf32>
    %c0_12 = arith.constant 0 : index
    %c0_13 = arith.constant 0 : index
    %c0_14 = arith.constant 0 : index
    %15 = vector.load %arg6[%c0_12, %c0_13, %c0_14] : memref<1x128x128xf32, #tpu.memory_space<vmem>>, vector<1x128x128xf32>
    %16 = vector.shape_cast %15 : vector<1x128x128xf32> to vector<128x128xf32>
    %17 = vector.shape_cast %14 : vector<128x128xf32> to vector<1x128x128xf32>
    tpu.vector_store %arg6[%c0_12, %c0_13, %c0_14], %17 {strides = array<i32>} : memref<1x128x128xf32, #tpu.memory_space<vmem>>, vector<1x128x128xf32>,
    return
  }
  func.func @transform_0(%arg0: i32, %arg1: i32) -> (i32, i32, i32) {
    %c0_i32 = arith.constant 0 : i32
    %c0_i32_0 = arith.constant 0 : i32
    return %arg0, %arg1, %c0_i32 : i32, i32, i32
  }
  func.func @transform_1(%arg0: i32, %arg1: i32) -> (i32, i32) {
    %c0_i32 = arith.constant 0 : i32
    %c0_i32_0 = arith.constant 0 : i32
    %c0_i32_1 = arith.constant 0 : i32
    return %c0_i32, %c0_i32_0 : i32, i32
  }
  func.func @transform_2(%arg0: i32, %arg1: i32) -> (i32, i32, i32) {
    %c0_i32 = arith.constant 0 : i32
    %c0_i32_0 = arith.constant 0 : i32
    %c0_i32_1 = arith.constant 0 : i32
    return %arg0, %c0_i32, %c0_i32_0 : i32, i32, i32
  }
  func.func @transform_3(%arg0: i32, %arg1: i32) -> (i32, i32, i32) {
    %c0_i32 = arith.constant 0 : i32
    %c0_i32_0 = arith.constant 0 : i32
    %c0_i32_1 = arith.constant 0 : i32
    return %arg0, %c0_i32, %c0_i32_0 : i32, i32, i32
  }
  func.func @transform_4(%arg0: i32, %arg1: i32) -> (i32, i32, i32) {
    %c0_i32 = arith.constant 0 : i32
    %c0_i32_0 = arith.constant 0 : i32
    return %arg0, %arg1, %c0_i32 : i32, i32, i32
  }
}

</mosaic_0001>

<bundles_post_ra>
// kernel: tpu_custom_call.1
= control target key start
LH: loop header
LB: loop body
LE: loop exit
PB: predicated region body
PF: predicated region fallthrough
CT: control target
= control target key end

     0   :  { %s1467_s0 = inlined_call_operand.hbm [shape: f32[2,256,128], index: 0, kind: input, shape index: {}]   ;;  %s1468_s1 = inlined_call_operand.hbm [shape: f32[128,128], index: 1, kind: input, shape index: {}]   ;;  %s1469_s2 = inlined_call_operand.hbm [shape: f32[2,1,128], index: 2, kind: input, shape index: {}]   ;;  %s1470_s3 = inlined_call_operand.vmem [shape: f32[2,1,128], index: 3, kind: input, shape index: {}]   ;;  %s1471_s4 = inlined_call_operand.hbm [shape: f32[2,256,128], index: 4, kind: output, shape index: {}]  }
   0x1   :  { %1476 = sst [smem:[#allocation18_spill]] %s1467_s0 }
   0x2   :  { %1477 = sst [smem:[#allocation19_spill]] %s1468_s1 }
   0x3   :  { %9 = vsyncpa [#allocation3], 0 }
   0x4   :  { %11 = vsyncpa [#allocation3 + $0x1], 0 }
   0x5   :  { %12 = vsyncpa [#allocation6], 0 }
   0x6   :  { %13 = vsyncpa [#allocation4], 0 }
   0x7   :  { %15 = vsyncpa [#allocation4 + $0x1], 0  ;;  %s1105_s15 = smov 0   ;;  %s1107_s16 = smov 0  }
   0x8   :  { %s1109_s17 = smov 0   ;;  %s1111_s18 = smov 0  }
   0x9   :  { %s1113_s19 = smov 0   ;;  %s1115_s20 = smov 0  }
   0xa   :  { %s1117_s21 = smov 0   ;;  %s1119_s22 = smov 0  }
   0xb   :  { %s1121_s23 = smov 0   ;;  %s1123_s24 = smov 0  }
   0xc   :  { %s1125_s25 = smov 0  }
   0xd LB: > { %1478 = sst [smem:[#allocation13_spill]] %s1065_s23  ;;  %s679_s26 = sadd.s32 4294967294, %s1073_s25   ;;  %s1073_s25 = sphi %s1125_s25, %s21_s25   ;;  %s1069_s24 = sphi %s1123_s24, %s1503_s24   ;;  %s1065_s23 = sphi %s1121_s23, %s1494_s23   ;;  %s1061_s22 = sphi %s1119_s22, %s1502_s22   ;;  %s1057_s21 = sphi %s1117_s21, %s1493_s21   ;;  %s1053_s20 = sphi %s1115_s20, %s1501_s20   ;;  %s1049_s19 = sphi %s1113_s19, %s1500_s19   ;;  %s1045_s18 = sphi %s1111_s18, %s1499_s18   ;;  %s1041_s17 = sphi %s1109_s17, %s1498_s17   ;;  %s1037_s16 = sphi %s1107_s16, %s1497_s16   ;;  %s1033_s15 = sphi %s1105_s15, %s1496_s15  }
   0xe   : > { %s30_s27 = sadd.s32 1, %s1065_s23  ;;  %s33_s28 = sadd.s32 1, %s1069_s24 }
   0xf   : > { %p31_p0 = scmp.ge.s32.totalorder %s30_s27, 2  ;;  %s42_s29 = sadd.s32 1, %s1053_s20 }
  0x10   : > { %p49_p1 = scmp.ne.s32.totalorder %s1053_s20, %s1049_s19  ;;  %p50_p2 = scmp.eq.s32.totalorder %s1073_s25, 0 }
  0x11   : > { %s1505_s27 = smov (%p31_p0, %s30_s27), 0  ;;  %s1507_s28 = smov (!%p31_p0, %s33_s28), %s1069_s24 }
  0x12   : > { %1479 = sst [smem:[#allocation14_spill]] %s1505_s27  ;;  %s38_s30 = ssub.s32 %s1065_s23, %s1505_s27 }
  0x13   : > { %p35_p3 = scmp.ge.s32.totalorder %s1507_s28, 2  ;;  %p55_p4 = scmp.ne.s32.totalorder %s1049_s19, %s1045_s18 }
  0x14   : > { %p1179_p5 = por %p50_p2, %p49_p1  ;;  %p160_p6 = scmp.eq.s32.totalorder %s679_s26, 3 }
  0x15   : > { %s1509_s28 = smov (%p35_p3, %s1507_s28), 0  ;;  %p755_p10 = scmp.lt.s32.totalorder %s1073_s25, 4 }
  0x16   : > { %1481 = sst [smem:[#allocation15_spill]] %s1509_s28  ;;  %p1188_p7 = por %p160_p6, %p55_p4 }
  0x17   : > { %s1194_s7 = ssub.s32 %s1069_s24, %s1509_s28  ;;  %s194_s9 = sand.u32 1, %s1073_s25  }
  0x18   : > { %s1482_s6 = scalar_select %p1188_p7, 1, 0 }
  0x19   : > { %s39_s8 = sor.u32 %s38_s30, %s1194_s7  ;;  %p87_p8 = scmp.eq.s32.totalorder %s1194_s7, 0 }
  0x1a   : > { %1483 = sst [smem:[#allocation16_spill]] %s1482_s6  ;;  %p40_p9 = scmp.eq.s32.totalorder %s39_s8, 0 }
  0x1b   : > { %s196_s11 = sand.u32 1, %s1053_s20   ;;  %s684_s13 = sshll.u32 %s1065_s23, 4 }
  0x1c   : > { %s1201_s10 = scalar_select %p40_p9, %s1053_s20, %s42_s29  }
  0x1d   : > { %s683_s12 = sshll.u32 %s196_s11, 7  ;;  %s685_s14 = sshll.u32 %s1069_s24, 5 }
  0x1e   : > { %1484 = sst [smem:[#allocation17_spill]] %s1201_s10  ;;  %s203_s26 = sadd.s32 %s685_s14, %s684_s13 }
  0x1f   : > { %s198_s28 = scalar_lea.vmem [#allocation2], %s683_s12  ;;  %s686_s30 = sshll.u32 %s203_s26, 3 }
  0x20   : > { %s208_s27 = sshll.u32 %s198_s28, 4  ;;  %s1485_s0 = sld [smem:[#allocation18_spill]]  ;;  %s209_s27 = int_to_ptr.vmem [resolvable:$true] %s208_s27 }
  0x21   : > { %p744_p11 = pnand %p755_p10, %p1179_p5  ;;  %s1213_s13 = scalar_lea.sflag [#allocation3], %s194_s9 }
  0x22   : > { %s1075_s12 = smov 128   ;;  %s1076_s28 = smov 8  }
  0x23   : > { %s1217_s14 = sadd.s32 4294967295, %s1073_s25   ;;  %p680_p0 = scmp.ge.s32.totalorder %s1073_s25, 1 }
  0x24   : > { %p56_p12 = scmp.eq.s32.totalorder %s1217_s14, 0  ;;  %p154_p13 = scmp.eq.s32.totalorder %s1217_s14, 3 }
  0x25   : > { %p167_p3 = scmp.lt.s32.totalorder %s1073_s25, 5  ;;  %s1489_s1 = sld [smem:[#allocation19_spill]] }
  0x26   : > { %s205_s29 = scalar_lea.hbm %s1485_s0, %s686_s30  ;;  %p1228_p5 = por %p56_p12, %p55_p4 }
  0x27   : > { %s206_s11 = sshll.u32 %s205_s29, 4  ;;  %p1235_p6 = por %p154_p13, %p49_p1  ;;  %s207_s11 = int_to_ptr.hbm [resolvable:$true] %s206_s11 }
  0x28   : > { %746 = dma.hbm_to_vmem [thread:$0]  (!%p744_p11), %s207_s11, 2048, %s209_s27, %s1213_s13, %s1075_s12, %s1075_s12, %s1076_s28  }
  0x29   : > { %p1239_p9 = pnand %p680_p0, %p167_p3  ;;  %s1077_s8 = smov [#allocation5]  }
  0x2a   : > { %s180_s29 = sshll.u32 %s1077_s8, 4  ;;  %s89_s11 = sadd.s32 1, %s1041_s17  ;;  %s181_s29 = int_to_ptr.vmem [resolvable:$true] %s180_s29 }
  0x2b   : > { %s178_s30 = sshll.u32 %s1489_s1, 4  ;;  %p739_p4 = pneg %p1239_p9  ;;  %s179_s30 = int_to_ptr.hbm [resolvable:$true] %s178_s30 }
  0x2c   : > { %p96_p11 = scmp.ne.s32.totalorder %s1041_s17, %s1037_s16  ;;  %p102_p0 = scmp.ne.s32.totalorder %s1037_s16, %s1033_s15 }
  0x2d   : > { %p740_p1 = pnand %p739_p4, %p56_p12  ;;  %s220_s9 = sand.u32 1, %s1041_s17  }
  0x2e   : > { %s1256_s0 = scalar_select %p87_p8, %s1041_s17, %s89_s11  }
  0x2f   : > { %742 = dma.hbm_to_vmem [thread:$0]  (!%p740_p1), %s179_s30, 2048, %s181_s29, [#allocation6], %s1075_s12, %s1075_s12, %s1076_s28  }
  0x30   : > { %p98_p13 = por %p96_p11, %p50_p2  ;;  %s224_s23 = scalar_lea.hbm %s1469_s2, %s1069_s24 }
  0x31   : > { %p1269_p3 = por %p102_p0, %p56_p12  ;;  %s226_s10 = sshll.u32 %s224_s23, 4  ;;  %s227_s10 = int_to_ptr.hbm [resolvable:$true] %s226_s10 }
  0x32   : > { %s221_s12 = scalar_lea.vmem [#allocation7], %s220_s9  ;;  %p747_p8 = pnand %p755_p10, %p98_p13 }
  0x33   : > { %s228_s28 = sshll.u32 %s221_s12, 4  ;;  %243 = sbr.rel (%p1239_p9) target bundleno = 454 (0x1c6), region = 36  ;;  %s229_s28 = int_to_ptr.vmem [resolvable:$true] %s228_s28 }
  0x34   : > { %749 = dma.hbm_to_vmem [thread:$0]  (!%p747_p8), %s227_s10, 16, %s229_s28, %s1213_s13  }
  0x35   : > { %s245_s1 = sand.u32 (!%p1239_p9), 1, %s1217_s14   ;;  %s247_s15 = sand.u32 (!%p1239_p9), 1, %s1049_s19  }
  0x36   : > { %s1282_s7 = sshll.u32 (!%p1239_p9), %s247_s15, 7  ;;  %s246_s23 = scalar_lea.sflag (!%p1239_p9), [#allocation3], %s245_s1 }
  0x37   : > { %s1285_s30 = scalar_lea.vmem (!%p1239_p9), [#allocation2], %s1282_s7 }
  0x38   : > { %1016 = dma.done.wait (%p1228_p5), %s246_s23, 2048  }
  0x39   : > { %1018 = vsyncadd (%p1228_p5), %s246_s23, 4294965248 }
  0x3a   : > { %1020 = dma.done.wait (%p56_p12), [#allocation6], 2048  }
  0x3b   : > { %1022 = vsyncadd (%p56_p12), [#allocation6], 4294965248  ;;  %s262_s10 = sand.u32 1, %s1037_s16  }
  0x3c   : > { %s263_s13 = scalar_lea.vmem [#allocation7], %s262_s10 }
  0x3d   : > { %1024 = dma.done.wait (%p1269_p3), %s246_s23, 16  }
  0x3e   : > { %1026 = vsyncadd (%p1269_p3), %s246_s23, 4294967280  ;;  %p297_p2 = scmp.lt.s32.totalorder %s1061_s22, 1  ;;  %v1304_v0 = vld [vmem:[#allocation5 + $0x78] sm:$0xff]  ;;  %v851_v1 = vld [vmem:[%s263_s13] ss:$0 sm:$0xff]  ;;  %s1394_s26 = scalar_lea.vmem [#allocation8], %s1282_s7 }
  0x3f   : > { %v1306_v2 = vld [vmem:[#allocation5 + $0x70] sm:$0xff]  ;;  %v353_v3 = vadd.f32 %v851_v1, %v1304_v0  ;;  %v1314_v5 = vld [vmem:[#allocation5 + $0x68] sm:$0xff]  ;;  %v1317_v7 = vld [vmem:[#allocation5 + $0x60] sm:$0xff]  ;;  %s692_s8 = sshll.u32 %s1057_s21, 4  ;;  %s693_s12 = sshll.u32 %s1061_s22, 5 }
  0x40   : > { %s1302_s27 = scalar_select %p297_p2, %s1061_s22, 1  ;;  %v352_v4 = vadd.f32 %v851_v1, %v1306_v2  ;;  %v351_v6 = vadd.f32 %v851_v1, %v1314_v5  ;;  %v350_v8 = vadd.f32 %v851_v1, %v1317_v7  ;;  %v1320_v9 = vld [vmem:[#allocation5 + $0x58] sm:$0xff]  ;;  %v1323_v11 = vld [vmem:[#allocation5 + $0x50] sm:$0xff]  ;;  %v1326_v13 = vld [vmem:[#allocation5 + $0x48] sm:$0xff] }
  0x41   : > { %697 = vmatpush.xpose.msra.mxu2 %v353_v3  ;;  %373 = vmatpush.xpose.msra.mxu0 %v353_v3  ;;  %v349_v10 = vadd.f32 %v851_v1, %v1320_v9  ;;  %v348_v12 = vadd.f32 %v851_v1, %v1323_v11  ;;  %v347_v14 = vadd.f32 %v851_v1, %v1326_v13  ;;  %v1329_v15 = vld [vmem:[#allocation5 + $0x40] sm:$0xff]  ;;  %v1332_v17 = vld [vmem:[#allocation5 + $0x38] sm:$0xff]  ;;  %v1335_v19 = vld [vmem:[#allocation5 + $0x30] sm:$0xff]  ;;  %s547_s28 = sadd.s32 %s693_s12, %s692_s8  ;;  %s550_s10 = sshll.u32 %s1394_s26, 4  ;;  %s551_s10 = int_to_ptr.vmem [resolvable:$true] %s550_s10 }
  0x42   : > { %s299_s29 = scalar_lea.vmem %s1470_s3, %s1302_s27  ;;  %v346_v16 = vadd.f32 %v851_v1, %v1329_v15  ;;  %v345_v18 = vadd.f32 %v851_v1, %v1332_v17  ;;  %v344_v20 = vadd.f32 %v851_v1, %v1335_v19  ;;  %v1338_v21 = vld [vmem:[#allocation5 + $0x28] sm:$0xff]  ;;  %v1341_v23 = vld [vmem:[#allocation5 + $0x20] sm:$0xff]  ;;  %v1344_v25 = vld [vmem:[#allocation5 + $0x18] sm:$0xff]  ;;  %s694_s1 = sshll.u32 %s547_s28, 3 }
  0x43   : > { %v343_v22 = vadd.f32 %v851_v1, %v1338_v21  ;;  %v342_v24 = vadd.f32 %v851_v1, %v1341_v23  ;;  %v341_v26 = vadd.f32 %v851_v1, %v1344_v25  ;;  %v1347_v27 = vld [vmem:[#allocation5 + $0x10] sm:$0xff]  ;;  %v1350_v29 = vld [vmem:[#allocation5 + $0x8] sm:$0xff]  ;;  %v1353_v31 = vld [vmem:[#allocation5] sm:$0xff]  ;;  %s536_s21 = scalar_lea.sflag [#allocation4], %s247_s15 }
  0x44   : > { %v340_v28 = vadd.f32 %v851_v1, %v1347_v27  ;;  %v339_v30 = vadd.f32 %v851_v1, %v1350_v29  ;;  %v338_v32 = vadd.f32 %v851_v1, %v1353_v31  ;;  %v309_v33 = vld [vmem:[%s1285_s30 + $0x40] sm:$0xff]  ;;  %v310_v35 = vld [vmem:[%s1285_s30 + $0x48] sm:$0xff]  ;;  %v311_v37 = vld [vmem:[%s1285_s30 + $0x50] sm:$0xff] }
  0x45   : > { %698 = vmatpush.xpose.msra.mxu2 %v352_v4  ;;  %374 = vmatpush.xpose.msra.mxu0 %v352_v4  ;;  %v301_v34 = vld [vmem:[%s1285_s30] sm:$0xff]  ;;  %v302_v36 = vld [vmem:[%s1285_s30 + $0x8] sm:$0xff]  ;;  %v303_v38 = vld [vmem:[%s1285_s30 + $0x10] sm:$0xff] }
  0x46   : > { %v312_v39 = vld [vmem:[%s1285_s30 + $0x58] sm:$0xff]  ;;  %v852_v41 = vld [vmem:[%s299_s29] ss:$0 sm:$0xff]  ;;  %v314_v47 = vld [vmem:[%s1285_s30 + $0x68] sm:$0xff]  ;;  %s963_s29 = scalar_lea.hbm %s1471_s4, 512 }
  0x47   : > { %v304_v40 = vld [vmem:[%s1285_s30 + $0x18] sm:$0xff]  ;;  %v372_v42 = vadd.f32 %v852_v41, %v1304_v0  ;;  %v313_v43 = vld [vmem:[%s1285_s30 + $0x60] sm:$0xff]  ;;  %v371_v45 = vadd.f32 %v852_v41, %v1306_v2  ;;  %v370_v46 = vadd.f32 %v852_v41, %v1314_v5  ;;  %v306_v48 = vld [vmem:[%s1285_s30 + $0x28] sm:$0xff]  ;;  %v369_v49 = vadd.f32 %v852_v41, %v1317_v7 }
  0x48   : > { %v305_v44 = vld [vmem:[%s1285_s30 + $0x20] sm:$0xff]  ;;  %v368_v50 = vadd.f32 %v852_v41, %v1320_v9  ;;  %v315_v51 = vld [vmem:[%s1285_s30 + $0x70] sm:$0xff]  ;;  %v367_v53 = vadd.f32 %v852_v41, %v1323_v11  ;;  %v366_v54 = vadd.f32 %v852_v41, %v1326_v13  ;;  %v316_v55 = vld [vmem:[%s1285_s30 + $0x78] sm:$0xff]  ;;  %v365_v57 = vadd.f32 %v852_v41, %v1329_v15 }
  0x49   : > { %699 = vmatpush.xpose.msra.mxu2 %v351_v6  ;;  %375 = vmatpush.xpose.msra.mxu0 %v351_v6  ;;  %v307_v52 = vld [vmem:[%s1285_s30 + $0x30] sm:$0xff]  ;;  %v308_v56 = vld [vmem:[%s1285_s30 + $0x38] sm:$0xff]  ;;  %v364_v58 = vadd.f32 %v852_v41, %v1332_v17  ;;  %v363_v59 = vadd.f32 %v852_v41, %v1335_v19  ;;  %v362_v60 = vadd.f32 %v852_v41, %v1338_v21  ;;  %s549_s30 = scalar_lea.hbm %s1471_s4, %s694_s1 }
  0x4a   : > { %713 = vmatpush.xpose.msra.mxu3 %v372_v42  ;;  %454 = vmatpush.xpose.msra.mxu1 %v372_v42  ;;  %v361_v61 = vadd.f32 %v852_v41, %v1341_v23  ;;  %v360_v62 = vadd.f32 %v852_v41, %v1344_v25  ;;  %v359_v63 = vadd.f32 %v852_v41, %v1347_v27  ;;  %s552_s13 = sshll.u32 %s549_s30, 4  ;;  %s553_s13 = int_to_ptr.hbm [resolvable:$true] %s552_s13 }
  0x4b   : > { %v358_v0 = vadd.f32 %v852_v41, %v1350_v29  ;;  %v357_v1 = vadd.f32 %v852_v41, %v1353_v31  ;;  %s957_s22 = sshra.s32 %s553_s13, 4  ;;  %s958_s22 = int_to_ptr.hbm [resolvable:$true] %s957_s22 }
  0x4c   : > { %s959_s27 = scalar_lea.hbm %s958_s22, 128  ;;  %p964_p9 = scmp.lt.s32.totalorder %s958_s22, %s1471_s4 }
  0x4d   : > { %700 = vmatpush.xpose.msra.mxu2 %v350_v8  ;;  %376 = vmatpush.xpose.msra.mxu0 %v350_v8  ;;  %p960_p10 = scmp.ne.s32.totalorder %s958_s22, %s959_s27  ;;  %p965_p4 = scmp.lt.s32.totalorder %s963_s29, %s959_s27 }
  0x4e   : > { %714 = vmatpush.xpose.msra.mxu3 %v371_v45  ;;  %455 = vmatpush.xpose.msra.mxu1 %v371_v45 }
  0x4f   : > { %p961_p12 = pnand %p960_p10, %p1235_p6  ;;  %p966_p1 = por %p965_p4, %p964_p9 }
  0x51   : > { %701 = vmatpush.xpose.msra.mxu2 %v349_v10  ;;  %377 = vmatpush.xpose.msra.mxu0 %v349_v10  ;;  %p962_p5 = pneg %p961_p12 }
  0x52   : > { %715 = vmatpush.xpose.msra.mxu3 %v370_v46  ;;  %456 = vmatpush.xpose.msra.mxu1 %v370_v46 }
  0x53   : > { %p967_p11 = pnand %p966_p1, %p962_p5 }
  0x55   : > { %702 = vmatpush.xpose.msra.mxu2 %v348_v12  ;;  %378 = vmatpush.xpose.msra.mxu0 %v348_v12 }
  0x56   : > { %716 = vmatpush.xpose.msra.mxu3 %v369_v49  ;;  %457 = vmatpush.xpose.msra.mxu1 %v369_v49 }
  0x59   : > { %703 = vmatpush.xpose.msra.mxu2 %v347_v14  ;;  %379 = vmatpush.xpose.msra.mxu0 %v347_v14 }
  0x5a   : > { %717 = vmatpush.xpose.msra.mxu3 %v368_v50  ;;  %458 = vmatpush.xpose.msra.mxu1 %v368_v50 }
  0x5d   : > { %704 = vmatpush.xpose.msra.mxu2 %v346_v16  ;;  %380 = vmatpush.xpose.msra.mxu0 %v346_v16 }
  0x5e   : > { %718 = vmatpush.xpose.msra.mxu3 %v367_v53  ;;  %459 = vmatpush.xpose.msra.mxu1 %v367_v53 }
  0x61   : > { %705 = vmatpush.xpose.msra.mxu2 %v345_v18  ;;  %381 = vmatpush.xpose.msra.mxu0 %v345_v18 }
  0x62   : > { %719 = vmatpush.xpose.msra.mxu3 %v366_v54  ;;  %460 = vmatpush.xpose.msra.mxu1 %v366_v54 }
  0x65   : > { %706 = vmatpush.xpose.msra.mxu2 %v344_v20  ;;  %382 = vmatpush.xpose.msra.mxu0 %v344_v20 }
  0x66   : > { %720 = vmatpush.xpose.msra.mxu3 %v365_v57  ;;  %461 = vmatpush.xpose.msra.mxu1 %v365_v57 }
  0x69   : > { %707 = vmatpush.xpose.msra.mxu2 %v343_v22  ;;  %383 = vmatpush.xpose.msra.mxu0 %v343_v22 }
  0x6a   : > { %721 = vmatpush.xpose.msra.mxu3 %v364_v58  ;;  %462 = vmatpush.xpose.msra.mxu1 %v364_v58 }
  0x6d   : > { %708 = vmatpush.xpose.msra.mxu2 %v342_v24  ;;  %384 = vmatpush.xpose.msra.mxu0 %v342_v24 }
  0x6e   : > { %722 = vmatpush.xpose.msra.mxu3 %v363_v59  ;;  %463 = vmatpush.xpose.msra.mxu1 %v363_v59 }
  0x71   : > { %709 = vmatpush.xpose.msra.mxu2 %v341_v26  ;;  %385 = vmatpush.xpose.msra.mxu0 %v341_v26 }
  0x72   : > { %723 = vmatpush.xpose.msra.mxu3 %v362_v60  ;;  %464 = vmatpush.xpose.msra.mxu1 %v362_v60 }
  0x75   : > { %710 = vmatpush.xpose.msra.mxu2 %v340_v28  ;;  %386 = vmatpush.xpose.msra.mxu0 %v340_v28 }
  0x76   : > { %724 = vmatpush.xpose.msra.mxu3 %v361_v61  ;;  %465 = vmatpush.xpose.msra.mxu1 %v361_v61 }
  0x79   : > { %711 = vmatpush.xpose.msra.mxu2 %v339_v30  ;;  %387 = vmatpush.xpose.msra.mxu0 %v339_v30 }
  0x7a   : > { %725 = vmatpush.xpose.msra.mxu3 %v360_v62  ;;  %466 = vmatpush.xpose.msra.mxu1 %v360_v62 }
  0x7d   : > { %712 = vmatpush.xpose.msra.mxu2 %v338_v32  ;;  %388 = vmatpush.xpose.msra.mxu0 %v338_v32 }
  0x7e   : > { %726 = vmatpush.xpose.msra.mxu3 %v359_v63  ;;  %467 = vmatpush.xpose.msra.mxu1 %v359_v63 }
  0x80   : > { %413 = vmatmul.f32.vlgmr.msra.gmra.mxu2 %v309_v33  ;;  %389 = vmatmul.f32.vlgmr.msra.gmra.mxu0 %v301_v34 }
  0x82   : > { %727 = vmatpush.xpose.msra.mxu3 %v358_v0  ;;  %468 = vmatpush.xpose.msra.mxu1 %v358_v0 }
  0x86   : > { %728 = vmatpush.xpose.msra.mxu3 %v357_v1  ;;  %469 = vmatpush.xpose.msra.mxu1 %v357_v1 }
  0x88   : > { %416 = vmatmul.f32.gmra.mxu2 %v310_v35  ;;  %392 = vmatmul.f32.gmra.mxu0 %v302_v36 }
  0x90   : > { %419 = vmatmul.f32.gmra.mxu2 %v311_v37  ;;  %395 = vmatmul.f32.gmra.mxu0 %v303_v38 }
  0x98   : > { %422 = vmatmul.f32.gmra.mxu2 %v312_v39  ;;  %398 = vmatmul.f32.gmra.mxu0 %v304_v40 }
  0xa0   : > { %425 = vmatmul.f32.gmra.mxu2 %v313_v43  ;;  %401 = vmatmul.f32.gmra.mxu0 %v305_v44 }
  0xa8   : > { %428 = vmatmul.f32.gmra.mxu2 %v314_v47  ;;  %404 = vmatmul.f32.gmra.mxu0 %v306_v48 }
  0xb0   : > { %431 = vmatmul.f32.gmra.mxu2 %v315_v51  ;;  %407 = vmatmul.f32.gmra.mxu0 %v307_v52 }
  0xb8   : > { %434 = vmatmul.f32.gmra.mxu2 %v316_v55  ;;  %410 = vmatmul.f32.gmra.mxu0 %v308_v56 }
  0xfd   : > { %v390_v2 = vpop.f32.mrf.mxu0 }
  0xfe   : > { %v438_v3 = vmax.f32 %v390_v2, 0.0 }
 0x100   : > { %470 = vmatmul.f32.vlgmr.msra.gmra.mxu1 %v438_v3 }
 0x103   : > { %v414_v4 = vpop.f32.mrf.mxu2 }
 0x104   : > { %v446_v5 = vmax.f32 %v414_v4, 0.0 }
 0x105   : > { %v393_v6 = vpop.f32.mrf.mxu0 }
 0x106   : > { %494 = vmatmul.f32.vlgmr.msra.gmra.mxu3 %v446_v5  ;;  %v439_v7 = vmax.f32 %v393_v6, 0.0 }
 0x108   : > { %473 = vmatmul.f32.gmra.mxu1 %v439_v7 }
 0x10b   : > { %v417_v8 = vpop.f32.mrf.mxu2 }
 0x10c   : > { %v447_v9 = vmax.f32 %v417_v8, 0.0 }
 0x10d   : > { %v396_v10 = vpop.f32.mrf.mxu0 }
 0x10e   : > { %497 = vmatmul.f32.gmra.mxu3 %v447_v9  ;;  %v440_v11 = vmax.f32 %v396_v10, 0.0 }
 0x110   : > { %476 = vmatmul.f32.gmra.mxu1 %v440_v11 }
 0x113   : > { %v420_v12 = vpop.f32.mrf.mxu2 }
 0x114   : > { %v448_v13 = vmax.f32 %v420_v12, 0.0 }
 0x115   : > { %v399_v14 = vpop.f32.mrf.mxu0 }
 0x116   : > { %500 = vmatmul.f32.gmra.mxu3 %v448_v13  ;;  %v441_v15 = vmax.f32 %v399_v14, 0.0 }
 0x118   : > { %479 = vmatmul.f32.gmra.mxu1 %v441_v15 }
 0x11b   : > { %v423_v16 = vpop.f32.mrf.mxu2 }
 0x11c   : > { %v449_v17 = vmax.f32 %v423_v16, 0.0 }
 0x11d   : > { %v402_v18 = vpop.f32.mrf.mxu0 }
 0x11e   : > { %503 = vmatmul.f32.gmra.mxu3 %v449_v17  ;;  %v442_v19 = vmax.f32 %v402_v18, 0.0 }
 0x120   : > { %482 = vmatmul.f32.gmra.mxu1 %v442_v19 }
 0x123   : > { %v426_v20 = vpop.f32.mrf.mxu2 }
 0x124   : > { %v450_v21 = vmax.f32 %v426_v20, 0.0 }
 0x125   : > { %v405_v22 = vpop.f32.mrf.mxu0 }
 0x126   : > { %506 = vmatmul.f32.gmra.mxu3 %v450_v21  ;;  %v443_v23 = vmax.f32 %v405_v22, 0.0 }
 0x128   : > { %485 = vmatmul.f32.gmra.mxu1 %v443_v23 }
 0x12b   : > { %v429_v24 = vpop.f32.mrf.mxu2 }
 0x12c   : > { %v451_v25 = vmax.f32 %v429_v24, 0.0 }
 0x12d   : > { %v408_v26 = vpop.f32.mrf.mxu0 }
 0x12e   : > { %509 = vmatmul.f32.gmra.mxu3 %v451_v25  ;;  %v444_v27 = vmax.f32 %v408_v26, 0.0 }
 0x130   : > { %488 = vmatmul.f32.gmra.mxu1 %v444_v27 }
 0x133   : > { %v432_v28 = vpop.f32.mrf.mxu2 }
 0x134   : > { %v452_v29 = vmax.f32 %v432_v28, 0.0 }
 0x135   : > { %v411_v30 = vpop.f32.mrf.mxu0 }
 0x136   : > { %512 = vmatmul.f32.gmra.mxu3 %v452_v29  ;;  %v445_v31 = vmax.f32 %v411_v30, 0.0 }
 0x138   : > { %491 = vmatmul.f32.gmra.mxu1 %v445_v31 }
 0x13b   : > { %v435_v32 = vpop.f32.mrf.mxu2 }
 0x13c   : > { %v453_v33 = vmax.f32 %v435_v32, 0.0 }
 0x13e   : > { %515 = vmatmul.f32.gmra.mxu3 %v453_v33 }
 0x17d   : > { %v471_v34 = vpop.f32.mrf.mxu1 }
 0x17e   : > { %519 = vst [vmem:[%s1394_s26] sm:$0xff] %v471_v34 }
 0x185   : > { %v474_v35 = vpop.f32.mrf.mxu1 }
 0x186   : > { %520 = vst [vmem:[%s1394_s26 + $0x8] sm:$0xff] %v474_v35 }
 0x189   : > { %v495_v36 = vpop.f32.mrf.mxu3 }
 0x18a   : > { %527 = vst [vmem:[%s1394_s26 + $0x40] sm:$0xff] %v495_v36 }
 0x18d   : > { %v477_v37 = vpop.f32.mrf.mxu1 }
 0x18e   : > { %521 = vst [vmem:[%s1394_s26 + $0x10] sm:$0xff] %v477_v37 }
 0x191   : > { %v498_v38 = vpop.f32.mrf.mxu3 }
 0x192   : > { %528 = vst [vmem:[%s1394_s26 + $0x48] sm:$0xff] %v498_v38 }
 0x195   : > { %v480_v39 = vpop.f32.mrf.mxu1 }
 0x196   : > { %522 = vst [vmem:[%s1394_s26 + $0x18] sm:$0xff] %v480_v39 }
 0x199   : > { %v501_v40 = vpop.f32.mrf.mxu3 }
 0x19a   : > { %529 = vst [vmem:[%s1394_s26 + $0x50] sm:$0xff] %v501_v40 }
 0x19d   : > { %v483_v41 = vpop.f32.mrf.mxu1 }
 0x19e   : > { %523 = vst [vmem:[%s1394_s26 + $0x20] sm:$0xff] %v483_v41 }
 0x1a1   : > { %v504_v42 = vpop.f32.mrf.mxu3 }
 0x1a2   : > { %530 = vst [vmem:[%s1394_s26 + $0x58] sm:$0xff] %v504_v42 }
 0x1a5   : > { %v486_v43 = vpop.f32.mrf.mxu1 }
 0x1a6   : > { %524 = vst [vmem:[%s1394_s26 + $0x28] sm:$0xff] %v486_v43 }
 0x1a9   : > { %v507_v44 = vpop.f32.mrf.mxu3 }
 0x1aa   : > { %531 = vst [vmem:[%s1394_s26 + $0x60] sm:$0xff] %v507_v44 }
 0x1ad   : > { %v489_v45 = vpop.f32.mrf.mxu1 }
 0x1ae   : > { %525 = vst [vmem:[%s1394_s26 + $0x30] sm:$0xff] %v489_v45 }
 0x1b1   : > { %v510_v46 = vpop.f32.mrf.mxu3 }
 0x1b2   : > { %532 = vst [vmem:[%s1394_s26 + $0x68] sm:$0xff] %v510_v46 }
 0x1b5   : > { %v492_v47 = vpop.f32.mrf.mxu1 }
 0x1b6   : > { %526 = vst [vmem:[%s1394_s26 + $0x38] sm:$0xff] %v492_v47 }
 0x1b9   : > { %v513_v48 = vpop.f32.mrf.mxu3 }
 0x1ba   : > { %533 = vst [vmem:[%s1394_s26 + $0x70] sm:$0xff] %v513_v48 }
 0x1c1   : > { %v516_v49 = vpop.f32.mrf.mxu3 }
 0x1c2   : > { %534 = vst [vmem:[%s1394_s26 + $0x78] sm:$0xff] %v516_v49 }
 0x1c3   : > { %970 = shalt.err (!%p967_p11)
}
 0x1c4   : > { %s1078_s15 = smov 128   ;;  %s1079_s26 = smov 8  }
 0x1c5   : > { %737 = dma.vmem_to_hbm [thread:$0]  (%p1235_p6), %s551_s10, 2048, %s553_s13, %s536_s21, %s1078_s15, %s1078_s15, %s1079_s26  }
 0x1c6 PF: > { %p757_p13 = scmp.ge.s32.totalorder %s1073_s25, 2  ;;  %s567_s12 = sand.u32 1, %s1045_s18  }
 0x1c7   : > { %s568_s28 = scalar_lea.sflag [#allocation4], %s567_s12 }
 0x1c8   : > { %p751_p0 = pnand %p757_p13, %p1188_p7 }
 0x1ca   : > { %p752_p3 = pneg %p751_p0 }
 0x1cc   : > { %1028 = dma.done.wait (%p752_p3), %s568_s28, 2048  }
 0x1cd   : > { %1030 = vsyncadd (%p752_p3), %s568_s28, 4294965248  ;;  %s21_s25 = sadd.s32 1, %s1073_s25   ;;  %s1492_s5 = sld [smem:[#allocation17_spill]] }
 0x1ce   : > { %p18_p8 = scmp.ge.s32.totalorder %s21_s25, 6   ;;  %s1493_s21 = sld [smem:[#allocation13_spill]] }
 0x1cf   : > { %s1494_s23 = sld [smem:[#allocation14_spill]]  ;;  %s1496_s15 = smov %s1037_s16 }
 0x1d0   : > { %s1495_s1 = sld [smem:[#allocation15_spill]]  ;;  %s1497_s16 = smov %s1041_s17 }
 0x1d1   : > { %s1498_s17 = smov %s1256_s0  ;;  %s1499_s18 = smov %s1049_s19 }
 0x1d2   : > { %s1500_s19 = smov %s1053_s20  ;;  %s1502_s22 = smov %s1069_s24 }
 0x1d3   : > { %s1501_s20 = smov %s1492_s5  ;;  %20 = sbr.rel (!%p18_p8) target bundleno = 13 (0xd), region = 99 }
 0x1d6   : > { %s1503_s24 = smov %s1495_s1 }
 0x1d8   :  { %574 = vsyncpa [#allocation3], 1 }
 0x1d9   :  { %576 = vsyncpa [#allocation3 + $0x1], 1 }
 0x1da   :  { %577 = vsyncpa [#allocation6], 1 }
 0x1db   :  { %578 = vsyncpa [#allocation4], 1 }
 0x1dc   :  { %580 = vsyncpa [#allocation4 + $0x1], 1 }

</bundles_post_ra>
